<compile_context>
chip_gen: v5e
topology: v5e:2x2
jax: 0.10.0
libtpu: 0.0.40
codegen_flags: <defaults>
</compile_context>

<pallas_src>
import functools

import jax
import jax.numpy as jnp
from jax import lax
from jax.experimental import pallas as pl
from jax.experimental.pallas import tpu as pltpu


_LANE = 128


def _round_up(x, m):
    return (x + m - 1) // m * m


def _vmem_capacity_bytes():
    try:
        return int(pltpu.get_tpu_info().vmem_capacity_bytes)
    except Exception:
        return 64 * 1024 * 1024          # conservative fallback (v7x-sized)


def _pick_row_tile(oh, ow, k4, cout_pad, budget_bytes, want_split):
    """Largest divisor of OH whose per-step working set (incl. temporaries) fits VMEM."""
    owp1 = ow + 1

    def need(toh):
        band = toh * owp1 * k4 * 2            # bf16 S2D band tile
        out_b = toh * ow * cout_pad * 2       # bf16 conv-out tile
        acc = toh * ow * cout_pad * 4         # f32 accumulator
        wts = 2 * 4 * k4 * cout_pad * 2       # bf16 tap weights (double-buffered)
        halo = 2 * owp1 * k4 * 2
        stats = 2 * 2 * cout_pad * 4
        # 2x band (double buffer) + ~3x band temporaries (lrelu copy / concat / tap slice)
        # + 2x out (double buffer) + ~3x acc temporaries (acc, tap result, centered copy)
        return 5 * band + 2 * out_b + 3 * acc + wts + halo + stats

    divs = sorted((d for d in range(1, oh + 1) if oh % d == 0), reverse=True)
    cap_rows = max(1, 2048 // max(ow, 1))     # keep per-step matmul M = TOH*OW modest
    toh = 1
    for d in divs:
        if d <= cap_rows and need(d) <= budget_bytes:
            toh = d
            break
    if want_split and toh == oh and oh > 1:   # make sure the grid has >= 2 steps (v7x 2 TCs)
        for d in divs:
            if d <= oh // 2:
                toh = d
                break
    return toh


# ---------------------------------------------------------------------------
# Kernel 1: LeakyReLU (bf16) + 4-tap space-to-depth conv (bf16 MXU, f32 acc)
#           + per-tile BatchNorm partial stats (sum, centered sum of squares).
# ---------------------------------------------------------------------------
def _conv_stats_kernel(band_ref, halo_ref, w_ref, o_ref, stats_ref, *, lelu_p):
    toh = band_ref.shape[1]
    k4 = band_ref.shape[3]
    ow = o_ref.shape[2]
    cp = o_ref.shape[3]
    m = toh * ow

    # LeakyReLU on the space-to-depth input (== LeakyReLU on the original input;
    # spatial zero-padding stays zero).  Done directly in bf16.
    x0 = band_ref[0]                                      # (TOH, OW+1, 4*Cin) bf16
    x0 = jnp.where(x0 >= 0, x0, lelu_p * x0)
    xh = halo_ref[0]                                      # (1, OW+1, 4*Cin) bf16
    xh = jnp.where(xh >= 0, xh, lelu_p * xh)

    if toh > 1:
        x1 = jnp.concatenate([x0[1:], xh], axis=0)        # band shifted down by one S2D row
    else:
        x1 = xh

    acc = jnp.zeros((m, cp), jnp.float32)
    for dr, xr in ((0, x0), (1, x1)):
        for dc in (0, 1):
            xt = xr[:, dc:dc + ow, :].reshape(m, k4)      # (TOH*OW, 4*Cin) bf16
            acc = acc + jnp.dot(xt, w_ref[2 * dr + dc],
                                preferred_element_type=jnp.float32)

    # bf16 conv intermediate (halves the HBM write + the BN-apply read).
    o_ref[0] = acc.reshape(toh, ow, cp).astype(o_ref.dtype)

    # Per-tile stats from the f32 accumulator: sum and mean-centered sum of squares
    # (numerically-stable Welford/Chan merge happens in the wrapper).
    s = jnp.sum(acc, axis=0, keepdims=True)               # (1, Cp)
    mu = s * (1.0 / m)
    d = acc - mu
    m2 = jnp.sum(d * d, axis=0, keepdims=True)            # (1, Cp)
    stats_ref[0, 0] = jnp.concatenate([s, m2], axis=0)    # (2, Cp)


# ---------------------------------------------------------------------------
# Kernel 2: BatchNorm affine apply  y * scale + shift  (per channel),
#           bf16 conv intermediate in, f32 NHWC (unpadded channels) out.
# ---------------------------------------------------------------------------
def _bn_apply_kernel(y_ref, scale_ref, shift_ref, o_ref):
    cout = o_ref.shape[3]
    y = y_ref[0][..., :cout].astype(jnp.float32)          # (TOH, OW, Cout)
    o_ref[0] = (y * scale_ref[...] + shift_ref[...]).astype(o_ref.dtype)


@functools.partial(jax.jit, static_argnames=("lelu_p", "bn_eps"))
def down_block_forward(x_nchw, w_oihw, gamma, beta, *, lelu_p=0.2, bn_eps=1e-5):
    """Forward pass of down_block (train-mode BatchNorm uses batch statistics)."""
    N, Cin, H, W = x_nchw.shape
    Cout = w_oihw.shape[0]
    assert H % 2 == 0 and W % 2 == 0  # TODO(synk): odd spatial sizes not supported here
    OH, OW = H // 2, W // 2
    K4 = 4 * Cin
    Cp = _round_up(Cout, _LANE)
    M = N * OH * OW

    # --- glue: NCHW -> padded NHWC -> 2x2 space-to-depth, cast bf16 (single ~1x copy) ---
    x = jnp.transpose(x_nchw, (0, 2, 3, 1))                       # NHWC
    xp = jnp.pad(x, ((0, 0), (1, 1), (1, 1), (0, 0)))             # (N, H+2, W+2, Cin)
    s2d = xp.reshape(N, OH + 1, 2, OW + 1, 2, Cin)
    s2d = jnp.transpose(s2d, (0, 1, 3, 2, 4, 5)).reshape(N, OH + 1, OW + 1, K4)
    s2d = s2d.astype(jnp.bfloat16)

    # --- glue: weights (Cout,Cin,4,4) -> 4 taps of (4*Cin, Cout_pad), bf16 ---
    wk = jnp.transpose(w_oihw, (2, 3, 1, 0))                      # (kh, kw, Cin, Cout)
    wk = wk.reshape(2, 2, 2, 2, Cin, Cout)                        # (dr, pr, dc, pc, Cin, Cout)
    wk = jnp.transpose(wk, (0, 2, 1, 3, 4, 5)).reshape(4, K4, Cout)
    if Cp != Cout:                                                # pad only when needed
        wk = jnp.pad(wk, ((0, 0), (0, 0), (0, Cp - Cout)))
    wk = wk.astype(jnp.bfloat16)

    # --- generation-aware tiling ---
    cap = _vmem_capacity_bytes()
    budget = cap // 2
    vmem_limit = int(cap * 3 // 4)
    TOH = _pick_row_tile(OH, OW, K4, Cp, budget, want_split=(N == 1))
    n_row_tiles = OH // TOH
    grid = (N, n_row_tiles)

    cost = pl.CostEstimate(
        flops=2 * M * 16 * Cin * Cp,
        transcendentals=0,
        bytes_accessed=(s2d.size * 2 + wk.size * 2
                        + N * OH * OW * Cp * 2 + N * n_row_tiles * 2 * Cp * 4))

    # --- Pallas pass 1: LeakyReLU + conv + per-tile BN partial stats ---
    conv_out, stats = pl.pallas_call(
        functools.partial(_conv_stats_kernel, lelu_p=lelu_p),
        out_shape=(jax.ShapeDtypeStruct((N, OH, OW, Cp), jnp.bfloat16),
                   jax.ShapeDtypeStruct((N, n_row_tiles, 2, Cp), jnp.float32)),
        grid_spec=pltpu.PrefetchScalarGridSpec(
            num_scalar_prefetch=0,
            grid=grid,
            in_specs=[
                # main S2D row band for this tile
                pl.BlockSpec((1, TOH, OW + 1, K4), lambda n, t: (n, t, 0, 0)),
                # 1-row halo (next S2D row); block size 1 => element-granular index
                pl.BlockSpec((1, 1, OW + 1, K4),
                             lambda n, t: (n, (t + 1) * TOH, 0, 0)),
                # 4 tap-weight matrices, whole array every step
                pl.BlockSpec((4, K4, Cp), lambda n, t: (0, 0, 0)),
            ],
            out_specs=(pl.BlockSpec((1, TOH, OW, Cp), lambda n, t: (n, t, 0, 0)),
                       pl.BlockSpec((1, 1, 2, Cp), lambda n, t: (n, t, 0, 0)))),
        compiler_params=pltpu.CompilerParams(
            dimension_semantics=("parallel", "parallel"),
            vmem_limit_bytes=vmem_limit),
        cost_estimate=cost,
    )(s2d, s2d, wk)

    # --- glue: Chan/Welford merge of equal-count per-tile stats -> scale / shift ---
    m_tile = TOH * OW
    s_sum = stats[:, :, 0, :Cout]                                 # (N, T, Cout)
    s_m2 = stats[:, :, 1, :Cout]
    mu_i = s_sum / m_tile
    mu = jnp.mean(mu_i, axis=(0, 1))                              # global mean (equal counts)
    var = (jnp.sum(s_m2, axis=(0, 1))
           + m_tile * jnp.sum((mu_i - mu) ** 2, axis=(0, 1))) / M
    var = jnp.maximum(var, 0.0)                                   # biased variance, as in BN train
    scale = gamma.astype(jnp.float32) * lax.rsqrt(var + bn_eps)
    shift = beta.astype(jnp.float32) - mu * scale
    scale2 = scale.reshape(1, Cout)
    shift2 = shift.reshape(1, Cout)

    # --- Pallas pass 2: apply batch norm, write f32 NHWC (unpadded channels) ---
    out_nhwc = pl.pallas_call(
        _bn_apply_kernel,
        out_shape=jax.ShapeDtypeStruct((N, OH, OW, Cout), x_nchw.dtype),
        grid_spec=pltpu.PrefetchScalarGridSpec(
            num_scalar_prefetch=0,
            grid=grid,
            in_specs=[pl.BlockSpec((1, TOH, OW, Cp), lambda n, t: (n, t, 0, 0)),
                      pl.BlockSpec((1, Cout), lambda n, t: (0, 0)),
                      pl.BlockSpec((1, Cout), lambda n, t: (0, 0))],
            out_specs=pl.BlockSpec((1, TOH, OW, Cout), lambda n, t: (n, t, 0, 0))),
        compiler_params=pltpu.CompilerParams(
            dimension_semantics=("parallel", "parallel"),
            vmem_limit_bytes=vmem_limit),
    )(conv_out, scale2, shift2)

    # --- glue: NHWC -> NCHW to match the PyTorch module's output layout ---
    return jnp.transpose(out_nhwc, (0, 3, 1, 2))


def reference_forward(x_nchw, w_oihw, gamma, beta, *, lelu_p=0.2, bn_eps=1e-5):
    """Pure-JAX f32 reference matching the PyTorch train-mode forward."""
    xr = jnp.where(x_nchw >= 0, x_nchw, lelu_p * x_nchw)
    y = lax.conv_general_dilated(
        xr, w_oihw, window_strides=(2, 2), padding=((1, 1), (1, 1)),
        dimension_numbers=("NCHW", "OIHW", "NCHW"))
    mean = y.mean(axis=(0, 2, 3), keepdims=True)
    var = y.var(axis=(0, 2, 3), keepdims=True)          # biased, as in BN training
    yhat = (y - mean) * lax.rsqrt(var + bn_eps)
    return yhat * gamma.reshape(1, -1, 1, 1) + beta.reshape(1, -1, 1, 1)


if __name__ == "__main__":
    key = jax.random.PRNGKey(0)
    k_x, k_w, k_g, k_b = jax.random.split(key, 4)

    N, Cin, H, W = 2, 4, 16, 16
    Cout = 8

    x = jax.random.normal(k_x, (N, Cin, H, W), dtype=jnp.float32)
    # Conv2d(in_nc, out_nc, kernel_size=4, stride=2, padding=1, bias=False) weight.
    w = 0.1 * jax.random.normal(k_w, (Cout, Cin, 4, 4), dtype=jnp.float32)
    # BatchNorm affine params.
    gamma = 1.0 + 0.1 * jax.random.normal(k_g, (Cout,), dtype=jnp.float32)
    beta = 0.1 * jax.random.normal(k_b, (Cout,), dtype=jnp.float32)

    out = jax.block_until_ready(down_block_forward(x, w, gamma, beta))
    ref = reference_forward(x, w, gamma, beta)

    assert out.shape == (N, Cout, H // 2, W // 2), out.shape
    max_err = float(jnp.max(jnp.abs(out - ref)))
    # bf16 MXU inputs + bf16 conv intermediate (f32 accumulation / stats) -> loosened tol.
    assert jnp.allclose(out, ref, atol=4e-2, rtol=4e-2), max_err

    print("KERNEL_OK")
</pallas_src>

<mosaic_0001>
module attributes {stable_mosaic.version = 11 : i64} {
  func.func @_conv_stats_kernel(%arg0: i32, %arg1: i32, %arg2: memref<1x8x9x16xbf16, #tpu.memory_space<vmem>>, %arg3: memref<1x1x9x16xbf16, #tpu.memory_space<vmem>>, %arg4: memref<4x16x128xbf16, #tpu.memory_space<vmem>>, %arg5: memref<1x8x8x128xbf16, #tpu.memory_space<vmem>>, %arg6: memref<1x1x2x128xf32, #tpu.memory_space<vmem>>) attributes {dimension_semantics = [#tpu.dimension_semantics<parallel>, #tpu.dimension_semantics<parallel>], iteration_bounds = array<i64: 2, 1>, scalar_prefetch = 0 : i64, scratch_operands = 0 : i64, tpu.core_type = #tpu.core_type<tc>, window_params = [{transform_indices = @transform_0, window_bounds = array<i64: 1, 8, 9, 16>}, {transform_indices = @transform_1, window_bounds = array<i64: 1, 1, 9, 16>}, {pipeline_mode = #tpu.pipeline_mode<synchronous>, transform_indices = @transform_2, window_bounds = array<i64: 4, 16, 128>}, {transform_indices = @transform_3, window_bounds = array<i64: 1, 8, 8, 128>}, {transform_indices = @transform_4, window_bounds = array<i64: 1, 1, 2, 128>}]} {
    %c0 = arith.constant 0 : index
    %c0_0 = arith.constant 0 : index
    %c0_1 = arith.constant 0 : index
    %c0_2 = arith.constant 0 : index
    %0 = vector.load %arg2[%c0, %c0_0, %c0_1, %c0_2] : memref<1x8x9x16xbf16, #tpu.memory_space<vmem>>, vector<1x8x9x16xbf16>
    %1 = vector.shape_cast %0 : vector<1x8x9x16xbf16> to vector<8x9x16xbf16>
    %cst = arith.constant 0.000000e+00 : bf16
    %2 = vector.broadcast %cst : bf16 to vector<8x9x16xbf16>
    %3 = arith.cmpf oge, %1, %2 : vector<8x9x16xbf16>
    %cst_3 = arith.constant 2.001950e-01 : bf16
    %4 = vector.broadcast %cst_3 : bf16 to vector<8x9x16xbf16>
    %5 = arith.mulf %4, %1 : vector<8x9x16xbf16>
    %6 = arith.select %3, %1, %5 : vector<8x9x16xi1>, vector<8x9x16xbf16>
    %c0_4 = arith.constant 0 : index
    %c0_5 = arith.constant 0 : index
    %c0_6 = arith.constant 0 : index
    %c0_7 = arith.constant 0 : index
    %7 = vector.load %arg3[%c0_4, %c0_5, %c0_6, %c0_7] : memref<1x1x9x16xbf16, #tpu.memory_space<vmem>>, vector<1x1x9x16xbf16>
    %8 = vector.shape_cast %7 : vector<1x1x9x16xbf16> to vector<1x9x16xbf16>
    %cst_8 = arith.constant 0.000000e+00 : bf16
    %9 = vector.broadcast %cst_8 : bf16 to vector<1x9x16xbf16>
    %10 = arith.cmpf oge, %8, %9 : vector<1x9x16xbf16>
    %cst_9 = arith.constant 2.001950e-01 : bf16
    %11 = vector.broadcast %cst_9 : bf16 to vector<1x9x16xbf16>
    %12 = arith.mulf %11, %8 : vector<1x9x16xbf16>
    %13 = arith.select %10, %8, %12 : vector<1x9x16xi1>, vector<1x9x16xbf16>
    %14 = vector.extract_strided_slice %6 {offsets = [1, 0, 0], sizes = [7, 9, 16], strides = [1, 1, 1]} : vector<8x9x16xbf16> to vector<7x9x16xbf16>
    %15 = tpu.concatenate %14, %13 in 0 : vector<7x9x16xbf16>, vector<1x9x16xbf16> -> vector<8x9x16xbf16>
    %cst_10 = arith.constant 0.000000e+00 : f32
    %16 = vector.broadcast %cst_10 : f32 to vector<64x128xf32>
    %17 = vector.extract_strided_slice %6 {offsets = [0, 0, 0], sizes = [8, 8, 16], strides = [1, 1, 1]} : vector<8x9x16xbf16> to vector<8x8x16xbf16>
    %18 = vector.shape_cast %17 : vector<8x8x16xbf16> to vector<64x16xbf16>
    %c0_11 = arith.constant 0 : index
    %c0_12 = arith.constant 0 : index
    %c0_13 = arith.constant 0 : index
    %19 = vector.load %arg4[%c0_11, %c0_12, %c0_13] : memref<4x16x128xbf16, #tpu.memory_space<vmem>>, vector<1x16x128xbf16>
    %20 = vector.shape_cast %19 : vector<1x16x128xbf16> to vector<16x128xbf16>
    %cst_14 = arith.constant dense<0.000000e+00> : vector<64x128xf32>
    %21 = tpu.matmul %18, %20, %cst_14 {dimension_numbers = #tpu.dot_dimension_numbers<[1], [0], [0], [1], [0, 0, 1, 1], [], []>} : vector<64x16xbf16>, vector<16x128xbf16>, vector<64x128xf32> -> vector<64x128xf32>
    %22 = arith.addf %16, %21 : vector<64x128xf32>
    %23 = vector.extract_strided_slice %6 {offsets = [0, 1, 0], sizes = [8, 8, 16], strides = [1, 1, 1]} : vector<8x9x16xbf16> to vector<8x8x16xbf16>
    %24 = vector.shape_cast %23 : vector<8x8x16xbf16> to vector<64x16xbf16>
    %c1 = arith.constant 1 : index
    %c0_15 = arith.constant 0 : index
    %c0_16 = arith.constant 0 : index
    %25 = vector.load %arg4[%c1, %c0_15, %c0_16] : memref<4x16x128xbf16, #tpu.memory_space<vmem>>, vector<1x16x128xbf16>
    %26 = vector.shape_cast %25 : vector<1x16x128xbf16> to vector<16x128xbf16>
    %cst_17 = arith.constant dense<0.000000e+00> : vector<64x128xf32>
    %27 = tpu.matmul %24, %26, %cst_17 {dimension_numbers = #tpu.dot_dimension_numbers<[1], [0], [0], [1], [0, 0, 1, 1], [], []>} : vector<64x16xbf16>, vector<16x128xbf16>, vector<64x128xf32> -> vector<64x128xf32>
    %28 = arith.addf %22, %27 : vector<64x128xf32>
    %29 = vector.extract_strided_slice %15 {offsets = [0, 0, 0], sizes = [8, 8, 16], strides = [1, 1, 1]} : vector<8x9x16xbf16> to vector<8x8x16xbf16>
    %30 = vector.shape_cast %29 : vector<8x8x16xbf16> to vector<64x16xbf16>
    %c2 = arith.constant 2 : index
    %c0_18 = arith.constant 0 : index
    %c0_19 = arith.constant 0 : index
    %31 = vector.load %arg4[%c2, %c0_18, %c0_19] : memref<4x16x128xbf16, #tpu.memory_space<vmem>>, vector<1x16x128xbf16>
    %32 = vector.shape_cast %31 : vector<1x16x128xbf16> to vector<16x128xbf16>
    %cst_20 = arith.constant dense<0.000000e+00> : vector<64x128xf32>
    %33 = tpu.matmul %30, %32, %cst_20 {dimension_numbers = #tpu.dot_dimension_numbers<[1], [0], [0], [1], [0, 0, 1, 1], [], []>} : vector<64x16xbf16>, vector<16x128xbf16>, vector<64x128xf32> -> vector<64x128xf32>
    %34 = arith.addf %28, %33 : vector<64x128xf32>
    %35 = vector.extract_strided_slice %15 {offsets = [0, 1, 0], sizes = [8, 8, 16], strides = [1, 1, 1]} : vector<8x9x16xbf16> to vector<8x8x16xbf16>
    %36 = vector.shape_cast %35 : vector<8x8x16xbf16> to vector<64x16xbf16>
    %c3 = arith.constant 3 : index
    %c0_21 = arith.constant 0 : index
    %c0_22 = arith.constant 0 : index
    %37 = vector.load %arg4[%c3, %c0_21, %c0_22] : memref<4x16x128xbf16, #tpu.memory_space<vmem>>, vector<1x16x128xbf16>
    %38 = vector.shape_cast %37 : vector<1x16x128xbf16> to vector<16x128xbf16>
    %cst_23 = arith.constant dense<0.000000e+00> : vector<64x128xf32>
    %39 = tpu.matmul %36, %38, %cst_23 {dimension_numbers = #tpu.dot_dimension_numbers<[1], [0], [0], [1], [0, 0, 1, 1], [], []>} : vector<64x16xbf16>, vector<16x128xbf16>, vector<64x128xf32> -> vector<64x128xf32>
    %40 = arith.addf %34, %39 : vector<64x128xf32>
    %41 = vector.shape_cast %40 : vector<64x128xf32> to vector<8x8x128xf32>
    %42 = arith.truncf %41 : vector<8x8x128xf32> to vector<8x8x128xbf16>
    %c0_24 = arith.constant 0 : index
    %c0_25 = arith.constant 0 : index
    %c0_26 = arith.constant 0 : index
    %c0_27 = arith.constant 0 : index
    %43 = vector.load %arg5[%c0_24, %c0_25, %c0_26, %c0_27] : memref<1x8x8x128xbf16, #tpu.memory_space<vmem>>, vector<1x8x8x128xbf16>
    %44 = vector.shape_cast %43 : vector<1x8x8x128xbf16> to vector<8x8x128xbf16>
    %45 = vector.shape_cast %42 : vector<8x8x128xbf16> to vector<1x8x8x128xbf16>
    tpu.vector_store %arg5[%c0_24, %c0_25, %c0_26, %c0_27], %45 {strides = array<i32>} : memref<1x8x8x128xbf16, #tpu.memory_space<vmem>>, vector<1x8x8x128xbf16>,
    %cst_28 = arith.constant dense<0.000000e+00> : vector<128xf32>
    %46 = vector.multi_reduction <add>, %40, %cst_28 [0] : vector<64x128xf32> to vector<128xf32>
    %47 = vector.shape_cast %46 : vector<128xf32> to vector<1x128xf32>
    %cst_29 = arith.constant 1.562500e-02 : f32
    %48 = vector.broadcast %cst_29 : f32 to vector<1x128xf32>
    %49 = arith.mulf %47, %48 : vector<1x128xf32>
    %50 = vector.broadcast %49 : vector<1x128xf32> to vector<64x128xf32>
    %51 = arith.subf %40, %50 : vector<64x128xf32>
    %52 = arith.mulf %51, %51 : vector<64x128xf32>
    %cst_30 = arith.constant dense<0.000000e+00> : vector<128xf32>
    %53 = vector.multi_reduction <add>, %52, %cst_30 [0] : vector<64x128xf32> to vector<128xf32>
    %54 = vector.shape_cast %53 : vector<128xf32> to vector<1x128xf32>
    %55 = tpu.concatenate %47, %54 in 0 : vector<1x128xf32>, vector<1x128xf32> -> vector<2x128xf32>
    %c0_31 = arith.constant 0 : index
    %c0_32 = arith.constant 0 : index
    %c0_33 = arith.constant 0 : index
    %c0_34 = arith.constant 0 : index
    %56 = vector.load %arg6[%c0_31, %c0_32, %c0_33, %c0_34] : memref<1x1x2x128xf32, #tpu.memory_space<vmem>>, vector<1x1x2x128xf32>
    %57 = vector.shape_cast %56 : vector<1x1x2x128xf32> to vector<2x128xf32>
    %58 = vector.shape_cast %55 : vector<2x128xf32> to vector<1x1x2x128xf32>
    tpu.vector_store %arg6[%c0_31, %c0_32, %c0_33, %c0_34], %58 {strides = array<i32>} : memref<1x1x2x128xf32, #tpu.memory_space<vmem>>, vector<1x1x2x128xf32>,
    return
  }
  func.func @transform_0(%arg0: i32, %arg1: i32) -> (i32, i32, i32, i32) {
    %c0_i32 = arith.constant 0 : i32
    %c0_i32_0 = arith.constant 0 : i32
    %c0_i32_1 = arith.constant 0 : i32
    return %arg0, %arg1, %c0_i32, %c0_i32_0 : i32, i32, i32, i32
  }
  func.func @transform_1(%arg0: i32, %arg1: i32) -> (i32, i32, i32, i32) {
    %c1_i32 = arith.constant 1 : i32
    %0 = arith.addi %arg1, %c1_i32 : i32
    %c8_i32 = arith.constant 8 : i32
    %1 = arith.muli %0, %c8_i32 : i32
    %c0_i32 = arith.constant 0 : i32
    %c0_i32_0 = arith.constant 0 : i32
    %c0_i32_1 = arith.constant 0 : i32
    return %arg0, %1, %c0_i32, %c0_i32_0 : i32, i32, i32, i32
  }
  func.func @transform_2(%arg0: i32, %arg1: i32) -> (i32, i32, i32) {
    %c0_i32 = arith.constant 0 : i32
    %c0_i32_0 = arith.constant 0 : i32
    %c0_i32_1 = arith.constant 0 : i32
    %c0_i32_2 = arith.constant 0 : i32
    return %c0_i32, %c0_i32_0, %c0_i32_1 : i32, i32, i32
  }
  func.func @transform_3(%arg0: i32, %arg1: i32) -> (i32, i32, i32, i32) {
    %c0_i32 = arith.constant 0 : i32
    %c0_i32_0 = arith.constant 0 : i32
    %c0_i32_1 = arith.constant 0 : i32
    return %arg0, %arg1, %c0_i32, %c0_i32_0 : i32, i32, i32, i32
  }
  func.func @transform_4(%arg0: i32, %arg1: i32) -> (i32, i32, i32, i32) {
    %c0_i32 = arith.constant 0 : i32
    %c0_i32_0 = arith.constant 0 : i32
    %c0_i32_1 = arith.constant 0 : i32
    return %arg0, %arg1, %c0_i32, %c0_i32_0 : i32, i32, i32, i32
  }
}

module attributes {stable_mosaic.version = 11 : i64} {
  func.func @_bn_apply_kernel(%arg0: i32, %arg1: i32, %arg2: memref<1x8x8x128xbf16, #tpu.memory_space<vmem>>, %arg3: memref<1x8xf32, #tpu.memory_space<vmem>>, %arg4: memref<1x8xf32, #tpu.memory_space<vmem>>, %arg5: memref<1x8x8x8xf32, #tpu.memory_space<vmem>>) attributes {dimension_semantics = [#tpu.dimension_semantics<parallel>, #tpu.dimension_semantics<parallel>], iteration_bounds = array<i64: 2, 1>, scalar_prefetch = 0 : i64, scratch_operands = 0 : i64, tpu.core_type = #tpu.core_type<tc>, window_params = [{transform_indices = @transform_0, window_bounds = array<i64: 1, 8, 8, 128>}, {pipeline_mode = #tpu.pipeline_mode<synchronous>, transform_indices = @transform_1, window_bounds = array<i64: 1, 8>}, {pipeline_mode = #tpu.pipeline_mode<synchronous>, transform_indices = @transform_2, window_bounds = array<i64: 1, 8>}, {transform_indices = @transform_3, window_bounds = array<i64: 1, 8, 8, 8>}]} {
    %c0 = arith.constant 0 : index
    %c0_0 = arith.constant 0 : index
    %c0_1 = arith.constant 0 : index
    %c0_2 = arith.constant 0 : index
    %0 = vector.load %arg2[%c0, %c0_0, %c0_1, %c0_2] : memref<1x8x8x128xbf16, #tpu.memory_space<vmem>>, vector<1x8x8x128xbf16>
    %1 = vector.shape_cast %0 : vector<1x8x8x128xbf16> to vector<8x8x128xbf16>
    %2 = vector.extract_strided_slice %1 {offsets = [0, 0, 0], sizes = [8, 8, 8], strides = [1, 1, 1]} : vector<8x8x128xbf16> to vector<8x8x8xbf16>
    %3 = arith.extf %2 : vector<8x8x8xbf16> to vector<8x8x8xf32>
    %c0_3 = arith.constant 0 : index
    %c0_4 = arith.constant 0 : index
    %4 = vector.load %arg3[%c0_3, %c0_4] : memref<1x8xf32, #tpu.memory_space<vmem>>, vector<1x8xf32>
    %5 = vector.shape_cast %4 : vector<1x8xf32> to vector<1x1x8xf32>
    %6 = vector.broadcast %5 : vector<1x1x8xf32> to vector<8x8x8xf32>
    %7 = arith.mulf %3, %6 : vector<8x8x8xf32>
    %c0_5 = arith.constant 0 : index
    %c0_6 = arith.constant 0 : index
    %8 = vector.load %arg4[%c0_5, %c0_6] : memref<1x8xf32, #tpu.memory_space<vmem>>, vector<1x8xf32>
    %9 = vector.shape_cast %8 : vector<1x8xf32> to vector<1x1x8xf32>
    %10 = vector.broadcast %9 : vector<1x1x8xf32> to vector<8x8x8xf32>
    %11 = arith.addf %7, %10 : vector<8x8x8xf32>
    %c0_7 = arith.constant 0 : index
    %c0_8 = arith.constant 0 : index
    %c0_9 = arith.constant 0 : index
    %c0_10 = arith.constant 0 : index
    %12 = vector.load %arg5[%c0_7, %c0_8, %c0_9, %c0_10] : memref<1x8x8x8xf32, #tpu.memory_space<vmem>>, vector<1x8x8x8xf32>
    %13 = vector.shape_cast %12 : vector<1x8x8x8xf32> to vector<8x8x8xf32>
    %14 = vector.shape_cast %11 : vector<8x8x8xf32> to vector<1x8x8x8xf32>
    tpu.vector_store %arg5[%c0_7, %c0_8, %c0_9, %c0_10], %14 {strides = array<i32>} : memref<1x8x8x8xf32, #tpu.memory_space<vmem>>, vector<1x8x8x8xf32>,
    return
  }
  func.func @transform_0(%arg0: i32, %arg1: i32) -> (i32, i32, i32, i32) {
    %c0_i32 = arith.constant 0 : i32
    %c0_i32_0 = arith.constant 0 : i32
    %c0_i32_1 = arith.constant 0 : i32
    return %arg0, %arg1, %c0_i32, %c0_i32_0 : i32, i32, i32, i32
  }
  func.func @transform_1(%arg0: i32, %arg1: i32) -> (i32, i32) {
    %c0_i32 = arith.constant 0 : i32
    %c0_i32_0 = arith.constant 0 : i32
    %c0_i32_1 = arith.constant 0 : i32
    return %c0_i32, %c0_i32_0 : i32, i32
  }
  func.func @transform_2(%arg0: i32, %arg1: i32) -> (i32, i32) {
    %c0_i32 = arith.constant 0 : i32
    %c0_i32_0 = arith.constant 0 : i32
    %c0_i32_1 = arith.constant 0 : i32
    return %c0_i32, %c0_i32_0 : i32, i32
  }
  func.func @transform_3(%arg0: i32, %arg1: i32) -> (i32, i32, i32, i32) {
    %c0_i32 = arith.constant 0 : i32
    %c0_i32_0 = arith.constant 0 : i32
    %c0_i32_1 = arith.constant 0 : i32
    return %arg0, %arg1, %c0_i32, %c0_i32_0 : i32, i32, i32, i32
  }
}

</mosaic_0001>

<bundles_post_ra>
// kernel: down_block_forward.3
= control target key start
LH: loop header
LB: loop body
LE: loop exit
PB: predicated region body
PF: predicated region fallthrough
CT: control target
= control target key end

     0   :  { %s448_s12 = smov 0   ;;  %s450_s13 = smov 0   ;;  %s495_s0 = inlined_call_operand.vmem [shape: bf16[2,8,8,128], index: 0, kind: input, shape index: {}]   ;;  %s496_s1 = inlined_call_operand.vmem [shape: f32[1,8], index: 1, kind: input, shape index: {}]   ;;  %s497_s2 = inlined_call_operand.vmem [shape: f32[1,8], index: 2, kind: input, shape index: {}]   ;;  %s498_s3 = inlined_call_operand.vmem [shape: f32[2,8,8,8], index: 3, kind: output, shape index: {}]  }
   0x1   :  { %s452_s14 = smov 0  }
   0x2 LB: > { %s25_s15 = sadd.s32 1, %s422_s13  ;;  %p350_p0 = scmp.ge.s32.totalorder %s426_s14, 1  ;;  %s426_s14 = sphi %s452_s14, %s13_s14   ;;  %s422_s13 = sphi %s450_s13, %s500_s13   ;;  %s418_s12 = sphi %s448_s12, %s499_s12  }
   0x3   : > { %p27_p1 = scmp.ge.s32.totalorder %s25_s15, 2  ;;  %p158_p2 = scmp.lt.s32.totalorder %s426_s14, 3 }
   0x5   : > { %s502_s15 = smov (%p27_p1, %s25_s15), 0  ;;  %p159_p3 = pnand %p350_p0, %p158_p2 }
   0x6   : > { %p191_p4 = scmp.lt.s32.totalorder (!%p159_p3), %s418_s12, 1 }
   0x7   : > { %162 = sbr.rel (%p159_p3) target bundleno = 30 (0x1e), region = 32 }
   0xc   : > { %s504_s12 = smov (!%p191_p4, %s418_s12), 1  ;;  %v402_v0 = vld [vmem:[%s496_s1] ss:$0 sm:$0xff]  ;;  %vm250_vm0 = vcmask 64512  }
   0xd   : > { %s357_s16 = sshll.u32 %s504_s12, 5  ;;  %s358_s22 = sshll.u32 %s504_s12, 6  ;;  %v403_v5 = vld [vmem:[%s497_s2] ss:$0 sm:$0xff] }
   0xe   : > { %s198_s19 = scalar_lea.vmem %s495_s0, %s357_s16  ;;  %s208_s27 = scalar_lea.vmem %s498_s3, %s358_s22 }
   0xf   : > { %v360_v1 = vld [vmem:[%s198_s19] sm:$0xff]   ;;  %v375_v2 = vld [vmem:[%s198_s19 + $0x8] sm:$0xff]   ;;  %v376_v3 = vld [vmem:[%s198_s19 + $0x10] sm:$0xff]  }
  0x10   : > { %v361_v4 = vunpack.c.l.bf16 %v360_v1  ;;  %v362_v6 = vunpack.c.h.bf16 %v360_v1  ;;  %v365_v7 = vunpack.c.l.bf16 %v375_v2  ;;  %v366_v8 = vunpack.c.h.bf16 %v375_v2  ;;  %v377_v9 = vld [vmem:[%s198_s19 + $0x18] sm:$0xff]  }
  0x11   : > { %v369_v10 = vunpack.c.l.bf16 %v376_v3  ;;  %v370_v11 = vunpack.c.h.bf16 %v376_v3  ;;  %v373_v12 = vunpack.c.l.bf16 %v377_v9  ;;  %v374_v13 = vunpack.c.h.bf16 %v377_v9 }
  0x12   : > { %v230_v14 = vmul.f32 %v402_v0, %v361_v4  ;;  %v231_v15 = vmul.f32 %v402_v0, %v362_v6  ;;  %v232_v16 = vmul.f32 %v402_v0, %v365_v7  ;;  %v233_v17 = vmul.f32 %v402_v0, %v366_v8 }
  0x13   : > { %v234_v18 = vmul.f32 %v402_v0, %v369_v10  ;;  %v235_v19 = vmul.f32 %v402_v0, %v370_v11  ;;  %v236_v23 = vmul.f32 %v402_v0, %v373_v12  ;;  %v237_v25 = vmul.f32 %v402_v0, %v374_v13 }
  0x14   : > { %v242_v20 = vadd.f32 %v403_v5, %v230_v14  ;;  %v243_v21 = vadd.f32 %v403_v5, %v231_v15  ;;  %v244_v22 = vadd.f32 %v403_v5, %v232_v16  ;;  %v245_v24 = vadd.f32 %v403_v5, %v233_v17 }
  0x15   : > { %v246_v26 = vadd.f32 %v403_v5, %v234_v18  ;;  %v247_v27 = vadd.f32 %v403_v5, %v235_v19  ;;  %v248_v28 = vadd.f32 %v403_v5, %v236_v23  ;;  %v249_v29 = vadd.f32 %v403_v5, %v237_v25 }
  0x16   : > { %251 = vst.msk [vmem:[%s208_s27] sm:$0xff] %vm250_vm0, %v242_v20 }
  0x17   : > { %252 = vst.msk [vmem:[%s208_s27 + $0x8] sm:$0xff] %vm250_vm0, %v243_v21 }
  0x18   : > { %253 = vst.msk [vmem:[%s208_s27 + $0x10] sm:$0xff] %vm250_vm0, %v244_v22 }
  0x19   : > { %254 = vst.msk [vmem:[%s208_s27 + $0x18] sm:$0xff] %vm250_vm0, %v245_v24 }
  0x1a   : > { %255 = vst.msk [vmem:[%s208_s27 + $0x20] sm:$0xff] %vm250_vm0, %v246_v26 }
  0x1b   : > { %256 = vst.msk [vmem:[%s208_s27 + $0x28] sm:$0xff] %vm250_vm0, %v247_v27 }
  0x1c   : > { %257 = vst.msk [vmem:[%s208_s27 + $0x30] sm:$0xff] %vm250_vm0, %v248_v28 }
  0x1d   : > { %258 = vst.msk [vmem:[%s208_s27 + $0x38] sm:$0xff] %vm250_vm0, %v249_v29 }
  0x1e PF: > { %s13_s14 = sadd.s32 1, %s426_s14   ;;  %s499_s12 = smov %s422_s13 }
  0x1f   : > { %p10_p5 = scmp.ge.s32.totalorder %s13_s14, 4   ;;  %s500_s13 = smov %s502_s15 }
  0x21   :  { %12 = sbr.rel (!%p10_p5) target bundleno = 2 (0x2), region = 62 }

// kernel: down_block_forward.2
= control target key start
LH: loop header
LB: loop body
LE: loop exit
PB: predicated region body
PF: predicated region fallthrough
CT: control target
= control target key end

     0   :  { %s1217_s15 = smov 0   ;;  %s1219_s16 = smov 0   ;;  %s1533_s0 = inlined_call_operand.vmem [shape: bf16[2,9,9,16], index: 0, kind: input, shape index: {}, may-alias: {0,1}]   ;;  %s1534_s1 = inlined_call_operand.vmem [shape: bf16[2,9,9,16], index: 1, kind: input, shape index: {}, may-alias: {0,1}]   ;;  %s1535_s2 = inlined_call_operand.vmem [shape: bf16[4,16,128], index: 2, kind: input, shape index: {}]   ;;  %s1536_s3 = inlined_call_operand.vmem [shape: bf16[2,8,8,128], index: 3, kind: output, shape index: {0}]   ;;  %s1537_s4 = inlined_call_operand.vmem [shape: f32[2,1,2,128], index: 4, kind: output, shape index: {1}]  }
   0x1   :  { %s1221_s17 = smov 0  }
   0x2 LB: > { %s27_s18 = sadd.s32 1, %s1186_s16  ;;  %p1065_p0 = scmp.ge.s32.totalorder %s1190_s17, 1  ;;  %s1190_s17 = sphi %s1221_s17, %s15_s17   ;;  %s1186_s16 = sphi %s1219_s16, %s1577_s16   ;;  %s1182_s15 = sphi %s1217_s15, %s1576_s15  }
   0x3   : > { %p29_p1 = scmp.ge.s32.totalorder %s27_s18, 2  ;;  %p223_p2 = scmp.lt.s32.totalorder %s1190_s17, 3 }
   0x5   : > { %s1579_s18 = smov (%p29_p1, %s27_s18), 0  ;;  %p224_p3 = pnand %p1065_p0, %p223_p2 }
   0x6   : > { %p287_p4 = scmp.lt.s32.totalorder (!%p224_p3), %s1182_s15, 1 }
   0x7   : > { %227 = sbr.rel (%p224_p3) target bundleno = 278 (0x116), region = 32 }
   0xc   : > { %v1116_v0 = vld [vmem:[%s1535_s2 + $0x10] sm:$0xff]  ;;  %v1114_v1 = vld [vmem:[%s1535_s2] sm:$0xff]  ;;  %v1115_v2 = vld [vmem:[%s1535_s2 + $0x8] sm:$0xff]  ;;  %s1581_s15 = smov (!%p287_p4, %s1182_s15), 1  ;;  %vm597_vm0 = vcmask 130048  }
   0xd   : > { %v1117_v3 = vld [vmem:[%s1535_s2 + $0x18] sm:$0xff]  ;;  %740 = vmatpush.bf16.msra.mxu2 %v1116_v0  ;;  %684 = vmatpush.bf16.msra.mxu1 %v1114_v1  ;;  %s1141_s27 = smul.u32 72, %s1581_s15  ;;  %vm461_vm3 = vsmask.f32 3328  ;;  %vm462_vm4 = vsmask.f32 7440 }
   0xe   : > { %617 = vmatpush.bf16.msra.mxu0 %v1115_v2  ;;  %817 = vmatpush.bf16.msra.mxu3 %v1117_v3  ;;  %vm1324_vm15 = vmor %vm461_vm3, %vm462_vm4  ;;  %s1113_s9 = sshll.u32 %s1581_s15, 5  ;;  %s1070_s13 = sshll.u32 %s1581_s15, 1 }
   0xf   : > { %s1255_s30 = scalar_lea.vmem %s1533_s0, %s1141_s27  ;;  %s1112_s5 = sadd.s32 64, %s1141_s27 }
  0x10   : > { %v335_v4 = vld [vmem:[%s1255_s30 + $0x8] sm:$0xf]  ;;  %v337_v5 = vld [vmem:[%s1255_s30 + $0x10] sm:$0xf]  ;;  %v333_v6 = vld [vmem:[%s1255_s30] sm:$0xf]  ;;  %s1405_s8 = scalar_lea.vmem %s1534_s1, %s1112_s5  ;;  %s1508_s12 = scalar_lea.vmem %s1536_s3, %s1113_s9 }
  0x11   : > { %v351_v7 = vunpack.c.l.bf16 %v335_v4  ;;  %v353_v8 = vunpack.c.l.bf16 %v337_v5  ;;  %v349_v9 = vunpack.c.l.bf16 %v333_v6  ;;  %v334_v10 = vld [vmem:[%s1255_s30 + $0x4] sm:$0x1]  ;;  %v336_v11 = vld [vmem:[%s1255_s30 + $0xc] sm:$0x1]  ;;  %v1263_v12 = vld [vmem:[%s1255_s30 + $0x14] sm:$0x1]  ;;  %s331_s20 = scalar_lea.vmem %s1537_s4, %s1070_s13 }
  0x12   : > { %v350_v13 = vunpack.c.l.bf16 %v334_v10  ;;  %v352_v14 = vunpack.c.l.bf16 %v336_v11  ;;  %v354_v15 = vunpack.c.l.bf16 %v1263_v12  ;;  %v1275_v20 = vld [vmem:[%s1255_s30 + $0x18] sm:$0xf]  ;;  %v341_v57 = vld [vmem:[%s1255_s30 + $0x20] sm:$0xf]  ;;  %v340_v62 = vld [vmem:[%s1255_s30 + $0x1c] sm:$0x1] }
  0x13   : > { %vm1266_vm1 = vcmp.ge.f32.partialorder %v351_v7, 0.0  ;;  %vm1270_vm2 = vcmp.ge.f32.partialorder %v353_v8, 0.0  ;;  %v383_v18 = vmul.f32 0.20019531, %v351_v7  ;;  %v385_v19 = vmul.f32 0.20019531, %v353_v8 }
  0x14   : > { %vm415_vm5 = vmpackc.low %vm1266_vm1, %vm1266_vm1  ;;  %vm1280_vm6 = vcmp.ge.f32.partialorder %v349_v9, 0.0  ;;  %v381_v22 = vmul.f32 0.20019531, %v349_v9  ;;  %vm1284_vm7 = vcmp.ge.f32.partialorder %v350_v13, 0.0  ;;  %vm1288_vm8 = vcmp.ge.f32.partialorder %v352_v14, 0.0 }
  0x15   : > { %v399_v25 = vpack.c.bf16 %v383_v18, %v383_v18  ;;  %v401_v26 = vpack.c.bf16 %v385_v19, %v385_v19  ;;  %vm417_vm9 = vmpackc.low %vm1270_vm2, %vm1270_vm2  ;;  %v382_v27 = vmul.f32 0.20019531, %v350_v13  ;;  %v384_v28 = vmul.f32 0.20019531, %v352_v14  ;;  %v342_v13 = vld [vmem:[%s1255_s30 + $0x24] sm:$0x1] }
  0x16   : > { %v397_v29 = vpack.c.bf16 %v381_v22, %v381_v22  ;;  %vm413_vm10 = vmpackc.low %vm1280_vm6, %vm1280_vm6  ;;  %vm1298_vm11 = vcmp.ge.f32.partialorder %v354_v15, 0.0  ;;  %v386_v31 = vmul.f32 0.20019531, %v354_v15  ;;  %v355_v32 = vunpack.c.l.bf16 %v1275_v20 }
  0x17   : > { %v431_v33 = vsel %vm415_vm5, %v335_v4, %v399_v25  ;;  %v1303_v34 = vsel %vm417_vm9, %v337_v5, %v401_v26  ;;  %v398_v35 = vpack.c.bf16 %v382_v27, %v382_v27  ;;  %v400_v36 = vpack.c.bf16 %v384_v28, %v384_v28  ;;  %vm414_vm12 = vmpackc.low %vm1284_vm7, %vm1284_vm7 }
  0x18   : > { %v479_v37 = vshrl.u32 %v431_v33, 16  ;;  %v482_v38 = vshll.u32 %v431_v33, 16  ;;  %v493_v39 = vshrl.u32 %v1303_v34, 16  ;;  %v496_v40 = vshll.u32 %v1303_v34, 16  ;;  %vm416_vm13 = vmpackc.low %vm1288_vm8, %vm1288_vm8 }
  0x19   : > { %v648_v41 = vunpack.c.l.b16 %v431_v33  ;;  %v649_v42 = vunpack.c.l.b16 %v1303_v34  ;;  %v429_v43 = vsel %vm413_vm10, %v333_v6, %v397_v29  ;;  %v430_v44 = vsel %vm414_vm12, %v334_v10, %v398_v35  ;;  %vm418_vm14 = vmpackc.low %vm1298_vm11, %vm1298_vm11 }
  0x1a   : > { %v481_v45 = vrot.slane %v479_v37, 4  ;;  %v484_v46 = vrot.slane %v482_v38, 5  ;;  %v495_v47 = vrot.slane %v493_v39, 4  ;;  %v498_v48 = vrot.slane %v496_v40, 5  ;;  %v343_v39 = vld [vmem:[%s1255_s30 + $0x28] sm:$0xf] }
  0x1b   : > { %v711_v49 = vpack.c.b16 %v649_v42, %v648_v41  ;;  %v465_v50 = vshrl.u32 %v429_v43, 16  ;;  %v468_v51 = vshll.u32 %v429_v43, 16  ;;  %v647_v52 = vunpack.c.l.b16 %v429_v43  ;;  %v446_v38 = vld [vmem:[%s1405_s8 + $0x4] sm:$0x1] }
  0x1c   : > { %v432_v53 = vsel %vm416_vm13, %v336_v11, %v400_v36  ;;  %v474_v54 = vshll.u32 %v430_v44, 16  ;;  %v485_v55 = vor.u32 %v484_v46, %v481_v45  ;;  %v402_v56 = vpack.c.bf16 %v386_v31, %v386_v31  ;;  %v345_v44 = vld [vmem:[%s1255_s30 + $0x30] sm:$0xf] }
  0x1d   : > { %1095 = vmatmul.msk.bf16.vlgmr.msra.gmra.mxu2 %vm597_vm0, %v711_v49  ;;  %v467_v58 = vrot.slane %v465_v50, 4  ;;  %v470_v59 = vrot.slane %v468_v51, 5  ;;  %v655_v60 = vpack.c.b16 %v648_v41, %v647_v52  ;;  %v488_v61 = vshll.u32 %v432_v53, 16  ;;  %v344_v49 = vld [vmem:[%s1255_s30 + $0x2c] sm:$0x1] }
  0x1e   : > { %v476_v0 = vrot.slane %v474_v54, 5  ;;  %v486_v1 = vrot.slane %v485_v55, 4  ;;  %v434_v2 = vsel %vm418_vm14, %v1263_v12, %v402_v56  ;;  %v499_v3 = vor.u32 %v498_v48, %v495_v47 }
  0x1f   : > { %1085 = vmatmul.msk.bf16.vlgmr.msra.gmra.mxu1 %vm597_vm0, %v655_v60  ;;  %v471_v4 = vor.u32 %v470_v59, %v467_v58  ;;  %v490_v5 = vrot.slane %v488_v61, 5  ;;  %v502_v6 = vshll.u32 %v434_v2, 16  ;;  %v357_v7 = vunpack.c.l.bf16 %v341_v57 }
  0x20   : > { %v500_v8 = vrot.slane %v499_v3, 4  ;;  %vm1330_vm1 = vcmp.ge.f32.partialorder %v355_v32, 0.0  ;;  %v387_v10 = vmul.f32 0.20019531, %v355_v32  ;;  %v356_v11 = vunpack.c.l.bf16 %v340_v62 }
  0x21   : > { %v472_v14 = vrot.slane %v471_v4, 4  ;;  %v491_v15 = vsel %vm1324_vm15, %v486_v1, %v490_v5  ;;  %v504_v12 = vrot.slane %v502_v6, 5  ;;  %vm1337_vm2 = vcmp.ge.f32.partialorder %v357_v7, 0.0  ;;  %vm419_vm3 = vmpackc.low %vm1330_vm1, %vm1330_vm1  ;;  %v1394_v1 = vld [vmem:[%s1255_s30 + $0x34] sm:$0x1] }
  0x22   : > { %v580_v17 = vunpack.c.l.b16 %v491_v15  ;;  %v389_v18 = vmul.f32 0.20019531, %v357_v7  ;;  %v403_v19 = vpack.c.bf16 %v387_v10, %v387_v10  ;;  %vm1344_vm4 = vcmp.ge.f32.partialorder %v356_v11, 0.0  ;;  %vm421_vm5 = vmpackc.low %vm1337_vm2, %vm1337_vm2  ;;  %v347_v6 = vld [vmem:[%s1255_s30 + $0x38] sm:$0xf] }
  0x23   : > { %v477_v22 = vsel %vm1324_vm15, %v472_v14, %v476_v0  ;;  %v505_v23 = vsel %vm1324_vm15, %v500_v8, %v504_v12  ;;  %v388_v24 = vmul.f32 0.20019531, %v356_v11  ;;  %v358_v25 = vunpack.c.l.bf16 %v342_v13  ;;  %vm420_vm6 = vmpackc.low %vm1344_vm4, %vm1344_vm4 }
  0x24   : > { %v579_v26 = vunpack.c.l.b16 %v477_v22  ;;  %v1355_v27 = vunpack.c.l.b16 %v505_v23  ;;  %v405_v28 = vpack.c.bf16 %v389_v18, %v389_v18  ;;  %v435_v29 = vsel %vm419_vm3, %v1275_v20, %v403_v19 }
  0x25   : > { %v507_v30 = vshrl.u32 %v435_v29, 16  ;;  %v510_v31 = vshll.u32 %v435_v29, 16  ;;  %v650_v32 = vunpack.c.l.b16 %v435_v29  ;;  %v404_v33 = vpack.c.bf16 %v388_v24, %v388_v24 }
  0x26   : > { %v587_v35 = vpack.c.b16 %v580_v17, %v579_v26  ;;  %v788_v36 = vpack.c.b16 %v1355_v27, %v580_v17  ;;  %v1362_v37 = vsel %vm421_vm5, %v341_v57, %v405_v28  ;;  %vm1364_vm7 = vcmp.ge.f32.partialorder %v358_v25, 0.0  ;;  %v445_v17 = vld [vmem:[%s1405_s8] sm:$0xf] }
  0x27   : > { %v509_v20 = vrot.slane %v507_v30, 4  ;;  %v512_v40 = vrot.slane %v510_v31, 5  ;;  %v521_v41 = vshrl.u32 %v1362_v37, 16  ;;  %v524_v43 = vshll.u32 %v1362_v37, 16  ;;  %vm422_vm8 = vmpackc.low %vm1364_vm7, %vm1364_vm7 }
  0x28   : > { %1077 = vmatmul.msk.bf16.vlgmr.msra.gmra.mxu0 %vm597_vm0, %v587_v35  ;;  %1105 = vmatmul.msk.bf16.vlgmr.msra.gmra.mxu3 %vm597_vm0, %v788_v36  ;;  %v651_v45 = vunpack.c.l.b16 %v1362_v37  ;;  %v656_v46 = vpack.c.b16 %v650_v32, %v649_v42  ;;  %v436_v47 = vsel %vm420_vm6, %v340_v62, %v404_v33  ;;  %v390_v48 = vmul.f32 0.20019531, %v358_v25 }
  0x29   : > { %v523_v50 = vrot.slane %v521_v41, 4  ;;  %v526_v51 = vrot.slane %v524_v43, 5  ;;  %v513_v52 = vor.u32 %v512_v40, %v509_v20  ;;  %v516_v53 = vshll.u32 %v436_v47, 16 }
  0x2a   : > { %v712_v54 = vpack.c.b16 %v651_v45, %v650_v32  ;;  %v406_v55 = vpack.c.bf16 %v390_v48, %v390_v48  ;;  %v359_v56 = vunpack.c.l.bf16 %v343_v39  ;;  %v361_v57 = vunpack.c.l.bf16 %v345_v44 }
  0x2b   : > { %v514_v34 = vrot.slane %v513_v52, 4  ;;  %v518_v42 = vrot.slane %v516_v53, 5  ;;  %v527_v58 = vor.u32 %v526_v51, %v523_v50  ;;  %v360_v59 = vunpack.c.l.bf16 %v344_v49 }
  0x2c   : > { %v438_v60 = vsel %vm422_vm8, %v342_v13, %v406_v55  ;;  %vm1385_vm9 = vcmp.ge.f32.partialorder %v359_v56, 0.0  ;;  %vm1389_vm10 = vcmp.ge.f32.partialorder %v361_v57, 0.0  ;;  %v391_v0 = vmul.f32 0.20019531, %v359_v56 }
  0x2d   : > { %1096 = vmatmul.msk.bf16.gmra.mxu2 %vm597_vm0, %v712_v54  ;;  %v519_v2 = vsel %vm1324_vm15, %v514_v34, %v518_v42  ;;  %v528_v3 = vrot.slane %v527_v58, 4  ;;  %v530_v4 = vshll.u32 %v438_v60, 16  ;;  %v393_v5 = vmul.f32 0.20019531, %v361_v57  ;;  %vm423_vm11 = vmpackc.low %vm1385_vm9, %vm1385_vm9 }
  0x2e   : > { %v582_v7 = vunpack.c.l.b16 %v519_v2  ;;  %v407_v8 = vpack.c.bf16 %v391_v0, %v391_v0  ;;  %vm425_vm12 = vmpackc.low %vm1389_vm10, %vm1389_vm10  ;;  %vm1411_vm13 = vcmp.ge.f32.partialorder %v360_v59, 0.0  ;;  %v392_v10 = vmul.f32 0.20019531, %v360_v59 }
  0x2f   : > { %1086 = vmatmul.msk.bf16.gmra.mxu1 %vm597_vm0, %v656_v46  ;;  %v532_v11 = vrot.slane %v530_v4, 5  ;;  %v409_v13 = vpack.c.bf16 %v393_v5, %v393_v5  ;;  %vm424_vm14 = vmpackc.low %vm1411_vm13, %vm1411_vm13  ;;  %v362_v12 = vunpack.c.l.bf16 %v1394_v1  ;;  %v363_v16 = vunpack.c.l.bf16 %v347_v6  ;;  %v348_v46 = vld [vmem:[%s1255_s30 + $0x3c] sm:$0x1] }
  0x30   : > { %v439_v14 = vsel %vm423_vm11, %v343_v39, %v407_v8  ;;  %v408_v15 = vpack.c.bf16 %v392_v10, %v392_v10  ;;  %v588_v23 = vpack.c.b16 %v582_v7, %v1355_v27  ;;  %v447_v31 = vunpack.c.l.bf16 %v445_v17 }
  0x31   : > { %v533_v18 = vsel %vm1324_vm15, %v528_v3, %v532_v11  ;;  %v1423_v19 = vsel %vm425_vm12, %v345_v44, %v409_v13  ;;  %v535_v21 = vshrl.u32 %v439_v14, 16  ;;  %v538_v22 = vshll.u32 %v439_v14, 16 }
  0x32   : > { %v1426_v24 = vunpack.c.l.b16 %v533_v18  ;;  %v549_v25 = vshrl.u32 %v1423_v19, 16  ;;  %v552_v26 = vshll.u32 %v1423_v19, 16  ;;  %v440_v30 = vsel %vm424_vm14, %v344_v49, %v408_v15 }
  0x33   : > { %v537_v28 = vrot.slane %v535_v21, 4  ;;  %v540_v29 = vrot.slane %v538_v22, 5  ;;  %v652_v36 = vunpack.c.l.b16 %v439_v14  ;;  %v653_v39 = vunpack.c.l.b16 %v1423_v19 }
  0x34   : > { %v789_v32 = vpack.c.b16 %v1426_v24, %v582_v7  ;;  %v551_v33 = vrot.slane %v549_v25, 4  ;;  %v554_v35 = vrot.slane %v552_v26, 5  ;;  %v544_v20 = vshll.u32 %v440_v30, 16 }
  0x35   : > { %v541_v27 = vor.u32 %v540_v29, %v537_v28  ;;  %vm1433_vm1 = vcmp.ge.f32.partialorder %v362_v12, 0.0  ;;  %v394_v41 = vmul.f32 0.20019531, %v362_v12  ;;  %vm1440_vm3 = vcmp.ge.f32.partialorder %v363_v16, 0.0 }
  0x36   : > { %vm426_vm2 = vmpackc.low %vm1433_vm1, %vm1433_vm1  ;;  %v395_v44 = vmul.f32 0.20019531, %v363_v16  ;;  %v555_v47 = vor.u32 %v554_v35, %v551_v33  ;;  %v448_v48 = vunpack.c.l.bf16 %v446_v38  ;;  %vm1448_vm5 = vcmp.ge.f32.partialorder %v447_v31, 0.0 }
  0x37   : > { %vm427_vm4 = vmpackc.low %vm1440_vm3, %vm1440_vm3  ;;  %v410_v50 = vpack.c.bf16 %v394_v41, %v394_v41  ;;  %v451_v52 = vmul.f32 0.20019531, %v447_v31  ;;  %v713_v53 = vpack.c.b16 %v653_v39, %v652_v36  ;;  %v542_v54 = vrot.slane %v541_v27, 4 }
  0x38   : > { %1078 = vmatmul.msk.bf16.gmra.mxu0 %vm597_vm0, %v588_v23  ;;  %1106 = vmatmul.msk.bf16.gmra.mxu3 %vm597_vm0, %v789_v32  ;;  %v411_v51 = vpack.c.bf16 %v395_v44, %v395_v44  ;;  %v546_v55 = vrot.slane %v544_v20, 5  ;;  %vm455_vm6 = vmpackc.low %vm1448_vm5, %vm1448_vm5  ;;  %v364_v56 = vunpack.c.l.bf16 %v348_v46  ;;  %v657_v57 = vpack.c.b16 %v652_v36, %v651_v45 }
  0x39   : > { %v442_v34 = vsel %vm426_vm2, %v1394_v1, %v410_v50  ;;  %v453_v58 = vpack.c.bf16 %v451_v52, %v451_v52  ;;  %v556_v59 = vrot.slane %v555_v47, 4  ;;  %v452_v61 = vmul.f32 0.20019531, %v448_v48 }
  0x3a   : > { %v443_v42 = vsel %vm427_vm4, %v347_v6, %v411_v51  ;;  %v558_v60 = vshll.u32 %v442_v34, 16  ;;  %vm1467_vm7 = vcmp.ge.f32.partialorder %v448_v48, 0.0  ;;  %vm1471_vm8 = vcmp.ge.f32.partialorder %v364_v56, 0.0 }
  0x3b   : > { %v457_v0 = vsel %vm455_vm6, %v445_v17, %v453_v58  ;;  %v396_v45 = vmul.f32 0.20019531, %v364_v56  ;;  %v547_v1 = vsel %vm1324_vm15, %v542_v54, %v546_v55  ;;  %v563_v3 = vshrl.u32 %v443_v42, 16  ;;  %vm456_vm9 = vmpackc.low %vm1467_vm7, %vm1467_vm7 }
  0x3c   : > { %v560_v2 = vrot.slane %v558_v60, 5  ;;  %v566_v4 = vshll.u32 %v443_v42, 16  ;;  %v771_v5 = vshrl.u32 %v457_v0, 16  ;;  %v774_v6 = vshll.u32 %v457_v0, 16  ;;  %vm428_vm10 = vmpackc.low %vm1471_vm8, %vm1471_vm8 }
  0x3d   : > { %1097 = vmatmul.msk.bf16.gmra.mxu2 %vm597_vm0, %v713_v53  ;;  %v412_v7 = vpack.c.bf16 %v396_v45, %v396_v45  ;;  %v454_v9 = vpack.c.bf16 %v452_v61, %v452_v61  ;;  %v584_v10 = vunpack.c.l.b16 %v547_v1  ;;  %v565_v13 = vrot.slane %v563_v3, 4 }
  0x3e   : > { %v561_v8 = vsel %vm1324_vm15, %v556_v59, %v560_v2  ;;  %v568_v14 = vrot.slane %v566_v4, 5  ;;  %v773_v15 = vrot.slane %v771_v5, 4  ;;  %v776_v12 = vrot.slane %v774_v6, 5 }
  0x3f   : > { %1087 = vmatmul.msk.bf16.gmra.mxu1 %vm597_vm0, %v657_v57  ;;  %v585_v11 = vunpack.c.l.b16 %v561_v8  ;;  %v444_v16 = vsel %vm428_vm10, %v348_v46, %v412_v7  ;;  %v458_v17 = vsel %vm456_vm9, %v446_v38, %v454_v9  ;;  %v589_v18 = vpack.c.b16 %v584_v10, %v1426_v24 }
  0x40   : > { %v654_v22 = vunpack.c.l.b16 %v443_v42  ;;  %v710_v23 = vunpack.c.l.b16 %v457_v0  ;;  %v569_v25 = vor.u32 %v568_v14, %v565_v13  ;;  %v572_v26 = vshll.u32 %v444_v16, 16 }
  0x41   : > { %v790_v21 = vpack.c.b16 %v585_v11, %v584_v10  ;;  %v777_v28 = vor.u32 %v776_v12, %v773_v15  ;;  %v780_v29 = vshll.u32 %v458_v17, 16 }
  0x42   : > { %v714_v30 = vpack.c.b16 %v710_v23, %v654_v22  ;;  %v570_v31 = vrot.slane %v569_v25, 4  ;;  %v574_v32 = vrot.slane %v572_v26, 5  ;;  %v658_v36 = vpack.c.b16 %v654_v22, %v653_v39 }
  0x43   : > { %v778_v33 = vrot.slane %v777_v28, 4  ;;  %v782_v35 = vrot.slane %v780_v29, 5 }
  0x44   : > { %v575_v24 = vsel %vm1324_vm15, %v570_v31, %v574_v32 }
  0x45   : > { %v783_v38 = vsel %vm1324_vm15, %v778_v33, %v782_v35  ;;  %v586_v27 = vunpack.c.l.b16 %v575_v24 }
  0x46   : > { %v787_v20 = vunpack.c.l.b16 %v783_v38 }
  0x47   : > { %v590_v40 = vpack.c.b16 %v586_v27, %v585_v11 }
  0x48   : > { %1079 = vmatmul.msk.bf16.gmra.mxu0 %vm597_vm0, %v589_v18  ;;  %1107 = vmatmul.msk.bf16.gmra.mxu3 %vm597_vm0, %v790_v21  ;;  %v791_v41 = vpack.c.b16 %v787_v20, %v586_v27 }
  0x4d   : > { %1098 = vmatmul.msk.bf16.gmra.mxu2 %vm597_vm0, %v714_v30 }
  0x4f   : > { %1088 = vmatmul.msk.bf16.gmra.mxu1 %vm597_vm0, %v658_v36 }
  0x58   : > { %1080 = vmatmul.msk.bf16.gmra.mxu0 %vm597_vm0, %v590_v40  ;;  %1108 = vmatmul.msk.bf16.gmra.mxu3 %vm597_vm0, %v791_v41  ;;  %vm906_vm0 = vcmask 1040384  }
  0x9c   : > { %v686_v19 = vpop.f32.mrf.mxu1 }
  0xa0   : > { %v742_v39 = vpop.f32.mrf.mxu2 }
  0xa4   : > { %v688_v43 = vpop.f32.mrf.mxu1 }
  0xa5   : > { %v619_v44 = vpop.f32.mrf.mxu0 }
  0xa6   : > { %v687_v48 = vadd.f32 %v686_v19, %v619_v44 }
  0xa8   : > { %v744_v46 = vpop.f32.mrf.mxu2  ;;  %v762_v51 = vadd.f32 %v742_v39, %v687_v48 }
  0xab   : > { %v819_v47 = vpop.f32.mrf.mxu3 }
  0xac   : > { %v691_v63 = vpop.f32.mrf.mxu1  ;;  %v1501_v55 = vadd.f32 %v819_v47, %v762_v51 }
  0xad   : > { %v621_v49 = vpop.f32.mrf.mxu0 }
  0xae   : > { %v689_v50 = vadd.f32 %v688_v43, %v621_v49 }
  0xb0   : > { %v747_v52 = vpop.f32.mrf.mxu2  ;;  %v763_v53 = vadd.f32 %v744_v46, %v689_v50 }
  0xb3   : > { %v821_v54 = vpop.f32.mrf.mxu3 }
  0xb4   : > { %v1503_v56 = vadd.f32 %v821_v54, %v763_v53  ;;  %v693_v34 = vpop.f32.mrf.mxu1 }
  0xb5   : > { %v624_v57 = vpop.f32.mrf.mxu0 }
  0xb6   : > { %v1121_v42 = vpack.c.bf16 %v1503_v56, %v1501_v55  ;;  %v692_v60 = vadd.f32 %v691_v63, %v624_v57  ;;  %v863_v26 = vadd.f32 %v1503_v56, %v1501_v55 }
  0xb8   : > { %1122 = vst [vmem:[%s1508_s12] sm:$0xff] %v1121_v42   ;;  %v749_v58 = vpop.f32.mrf.mxu2  ;;  %v764_v37 = vadd.f32 %v747_v52, %v692_v60 }
  0xbb   : > { %v824_v59 = vpop.f32.mrf.mxu3 }
  0xbc   : > { %v696_v0 = vpop.f32.mrf.mxu1  ;;  %v841_v3 = vadd.f32 %v824_v59, %v764_v37 }
  0xbd   : > { %v626_v61 = vpop.f32.mrf.mxu0 }
  0xbe   : > { %v694_v62 = vadd.f32 %v693_v34, %v626_v61  ;;  %v864_v29 = vadd.f32 %v863_v26, %v841_v3 }
  0xc0   : > { %v765_v45 = vadd.f32 %v749_v58, %v694_v62  ;;  %v752_v1 = vpop.f32.mrf.mxu2 }
  0xc3   : > { %v826_v2 = vpop.f32.mrf.mxu3 }
  0xc4   : > { %v842_v4 = vadd.f32 %v826_v2, %v765_v45  ;;  %v698_v7 = vpop.f32.mrf.mxu1 }
  0xc5   : > { %v629_v5 = vpop.f32.mrf.mxu0 }
  0xc6   : > { %v1126_v6 = vpack.c.bf16 %v842_v4, %v841_v3  ;;  %v697_v9 = vadd.f32 %v696_v0, %v629_v5  ;;  %v865_v33 = vadd.f32 %v864_v29, %v842_v4 }
  0xc8   : > { %1138 = vst [vmem:[%s1508_s12 + $0x8] sm:$0xff] %v1126_v6   ;;  %v754_v10 = vpop.f32.mrf.mxu2  ;;  %v766_v14 = vadd.f32 %v752_v1, %v697_v9 }
  0xcb   : > { %v829_v8 = vpop.f32.mrf.mxu3 }
  0xcc   : > { %v701_v12 = vpop.f32.mrf.mxu1  ;;  %v843_v17 = vadd.f32 %v829_v8, %v766_v14 }
  0xcd   : > { %v631_v11 = vpop.f32.mrf.mxu0 }
  0xce   : > { %v699_v13 = vadd.f32 %v698_v7, %v631_v11  ;;  %v866_v36 = vadd.f32 %v865_v33, %v843_v17 }
  0xd0   : > { %v767_v15 = vadd.f32 %v754_v10, %v699_v13  ;;  %v757_v23 = vpop.f32.mrf.mxu2 }
  0xd3   : > { %v831_v16 = vpop.f32.mrf.mxu3 }
  0xd4   : > { %v844_v18 = vadd.f32 %v831_v16, %v767_v15  ;;  %v703_v31 = vpop.f32.mrf.mxu1 }
  0xd5   : > { %v634_v21 = vpop.f32.mrf.mxu0 }
  0xd6   : > { %v1131_v22 = vpack.c.bf16 %v844_v18, %v843_v17  ;;  %v702_v25 = vadd.f32 %v701_v12, %v634_v21  ;;  %v867_v27 = vadd.f32 %v866_v36, %v844_v18 }
  0xd8   : > { %1139 = vst [vmem:[%s1508_s12 + $0x10] sm:$0xff] %v1131_v22   ;;  %v768_v30 = vadd.f32 %v757_v23, %v702_v25  ;;  %v759_v38 = vpop.f32.mrf.mxu2 }
  0xdb   : > { %v834_v28 = vpop.f32.mrf.mxu3 }
  0xdc   : > { %v845_v24 = vadd.f32 %v834_v28, %v768_v30 }
  0xdd   : > { %v636_v32 = vpop.f32.mrf.mxu0 }
  0xde   : > { %v704_v35 = vadd.f32 %v703_v31, %v636_v32  ;;  %v868_v41 = vadd.f32 %v867_v27, %v845_v24 }
  0xe0   : > { %v769_v20 = vadd.f32 %v759_v38, %v704_v35 }
  0xe3   : > { %v836_v40 = vpop.f32.mrf.mxu3 }
  0xe4   : > { %v846_v19 = vadd.f32 %v836_v40, %v769_v20 }
  0xe6   : > { %v1136_v39 = vpack.c.bf16 %v846_v19, %v845_v24  ;;  %v869_v43 = vadd.f32 %v868_v41, %v846_v19 }
  0xe8   : > { %1140 = vst [vmem:[%s1508_s12 + $0x18] sm:$0xff] %v1136_v39   ;;  %v870_v44 = vrot.slane %v869_v43, 4 }
  0xea   : > { %v871_v46 = vadd.f32 %v870_v44, %v869_v43 }
  0xec   : > { %v872_v47 = vrot.slane %v871_v46, 2 }
  0xee   : > { %v873_v48 = vadd.f32 %v872_v47, %v871_v46 }
  0xf0   : > { %v874_v63 = vrot.slane %v873_v48, 1 }
  0xf2   : > { %v875_v49 = vadd.f32 %v874_v63, %v873_v48 }
  0xf4   : > { %v876_v50 = vmul.f32 0.015625, %v875_v49 }
  0xf6   : > { %v877_v51 = vsub.f32 %v1501_v55, %v876_v50  ;;  %v878_v52 = vsub.f32 %v1503_v56, %v876_v50  ;;  %v879_v53 = vsub.f32 %v841_v3, %v876_v50  ;;  %v880_v54 = vsub.f32 %v842_v4, %v876_v50 }
  0xf7   : > { %v881_v42 = vsub.f32 %v843_v17, %v876_v50  ;;  %v882_v60 = vsub.f32 %v844_v18, %v876_v50  ;;  %v883_v0 = vsub.f32 %v845_v24, %v876_v50  ;;  %v884_v1 = vsub.f32 %v846_v19, %v876_v50 }
  0xf8   : > { %v885_v57 = vmul.f32 %v877_v51, %v877_v51  ;;  %v886_v34 = vmul.f32 %v878_v52, %v878_v52  ;;  %v887_v58 = vmul.f32 %v879_v53, %v879_v53  ;;  %v888_v61 = vmul.f32 %v880_v54, %v880_v54 }
  0xf9   : > { %v889_v37 = vmul.f32 %v881_v42, %v881_v42  ;;  %v890_v2 = vmul.f32 %v882_v60, %v882_v60  ;;  %v891_v55 = vmul.f32 %v883_v0, %v883_v0  ;;  %v892_v56 = vmul.f32 %v884_v1, %v884_v1 }
  0xfa   : > { %v893_v59 = vadd.f32 %v886_v34, %v885_v57 }
  0xfc   : > { %v894_v62 = vadd.f32 %v893_v59, %v887_v58 }
  0xfe   : > { %v895_v45 = vadd.f32 %v894_v62, %v888_v61 }
 0x100   : > { %v896_v5 = vadd.f32 %v895_v45, %v889_v37 }
 0x102   : > { %v897_v6 = vadd.f32 %v896_v5, %v890_v2 }
 0x104   : > { %v898_v3 = vadd.f32 %v897_v6, %v891_v55 }
 0x106   : > { %v899_v4 = vadd.f32 %v898_v3, %v892_v56 }
 0x108   : > { %v900_v7 = vrot.slane %v899_v4, 4 }
 0x10a   : > { %v901_v8 = vadd.f32 %v900_v7, %v899_v4 }
 0x10c   : > { %v902_v9 = vrot.slane %v901_v8, 2 }
 0x10e   : > { %v903_v10 = vadd.f32 %v902_v9, %v901_v8 }
 0x110   : > { %v904_v11 = vrot.slane %v903_v10, 1 }
 0x112   : > { %v905_v13 = vadd.f32 %v904_v11, %v903_v10 }
 0x114   : > { %v907_v14 = vsel %vm906_vm0, %v875_v49, %v905_v13 }
 0x115   : > { %908 = vst [vmem:[%s331_s20] sm:$0x3] %v907_v14 }
 0x116 PF: > { %s15_s17 = sadd.s32 1, %s1190_s17   ;;  %s1576_s15 = smov %s1186_s16 }
 0x117   : > { %p12_p5 = scmp.ge.s32.totalorder %s15_s17, 4   ;;  %s1577_s16 = smov %s1579_s18 }
 0x119   :  { %14 = sbr.rel (!%p12_p5) target bundleno = 2 (0x2), region = 80 }

</bundles_post_ra>
